<compile_context>
chip_gen: v6e
topology: v6e:2x2x1
jax: 0.10.0
libtpu: 0.0.40
codegen_flags: <defaults>
</compile_context>

<pallas_src>
import jax
import jax.numpy as jnp
from jax.experimental import pallas as pl
from jax.experimental.pallas import tpu as pltpu


# ---------------------------------------------------------------------------
# Path A: small vocab table kept VMEM-resident, rows selected by one-hot matmul.
# ---------------------------------------------------------------------------
def _onehot_embed_kernel(ids_ref, vocab_ref, pos_ref, out_ref):
    T = out_ref.shape[0]
    V = vocab_ref.shape[0]
    ids = ids_ref[...]                                            # (T, 1) int32
    iota = jax.lax.broadcasted_iota(jnp.int32, (T, V), 1)
    onehot = (iota == ids).astype(vocab_ref.dtype)                # (T, V)
    word = jnp.dot(onehot, vocab_ref[...],
                   precision=jax.lax.Precision.HIGHEST,
                   preferred_element_type=jnp.float32)            # (T, D) f32
    out_ref[...] = (word + pos_ref[...].astype(jnp.float32)).astype(out_ref.dtype)


def _onehot_embed(ids_flat, vocab_emb, pos_emb, T):
    N = ids_flat.shape[0]
    V, D = vocab_emb.shape
    S = pos_emb.shape[0]
    num_tiles = N // T
    tiles_per_seq = S // T
    isz = jnp.dtype(vocab_emb.dtype).itemsize

    ids_2d = ids_flat.reshape(N, 1)

    vmem_needed = 2 * V * D * isz + 6 * T * D * isz + 2 * T * 4
    vmem_limit = int(min(100 << 20, max(2 * vmem_needed, 16 << 20)))
    cost = pl.CostEstimate(
        flops=2 * N * V * D + N * D,
        transcendentals=0,
        bytes_accessed=V * D * isz + 2 * N * D * isz + 4 * N,
    )
    return pl.pallas_call(
        _onehot_embed_kernel,
        out_shape=jax.ShapeDtypeStruct((N, D), vocab_emb.dtype),
        grid=(num_tiles,),
        in_specs=[
            pl.BlockSpec((T, 1), lambda t: (t, 0)),               # token ids
            pl.BlockSpec((V, D), lambda t: (0, 0)),               # resident vocab
            pl.BlockSpec((T, D), lambda t: (t % tiles_per_seq, 0)),  # pos tile
        ],
        out_specs=pl.BlockSpec((T, D), lambda t: (t, 0)),
        compiler_params=pltpu.CompilerParams(
            dimension_semantics=("parallel",),
            vmem_limit_bytes=vmem_limit,
        ),
        cost_estimate=cost,
    )(ids_2d, vocab_emb, pos_emb)


# ---------------------------------------------------------------------------
# Path B: large vocab table stays in HBM; per-row DMA gather into a slot ring.
# ---------------------------------------------------------------------------
def _make_gather_kernel(T, num_tiles, nbuf):
    def kernel(ids_ref, vocab_hbm, pos_ref, out_ref, vbuf, sem):
        t = pl.program_id(0)

        def issue_tile(tile_idx, slot):
            base = tile_idx * T
            # Fully unrolled descriptor issue: SMEM id loads pipeline with the
            # descriptor pushes. All T copies signal the same slot semaphore.
            for r in range(T):
                row = ids_ref[base + r]
                pltpu.make_async_copy(
                    vocab_hbm.at[row], vbuf.at[slot, r], sem.at[slot]
                ).start()

        # Prime the pipeline: the first step issues tiles 0 .. nbuf-2.
        @pl.when(t == 0)
        def _():
            for j in range(min(nbuf - 1, num_tiles)):
                issue_tile(j, j)

        # Keep nbuf tiles in flight: issue tile t + nbuf - 1 (if it exists).
        nxt = t + (nbuf - 1)

        @pl.when(nxt < num_tiles)
        def _():
            issue_tile(nxt, nxt % nbuf)

        # Hoist vector loads above the semaphore wait (wait breaks SMEM fwd).
        pos = pos_ref[...]

        # Single aggregate wait: each row copy signalled sem[slot] with
        # D*itemsize bytes, so one wait described by the full (T, D) slot
        # consumes exactly the T row completions of the current tile.
        slot = t % nbuf
        pltpu.make_async_copy(
            vocab_hbm.at[pl.ds(0, T)], vbuf.at[slot], sem.at[slot]
        ).wait()

        out_ref[...] = (vbuf[slot] + pos).astype(out_ref.dtype)

    return kernel


def _gather_embed(ids_flat, vocab_emb, pos_emb, T, nbuf):
    N = ids_flat.shape[0]
    V, D = vocab_emb.shape
    S = pos_emb.shape[0]
    num_tiles = N // T
    tiles_per_seq = S // T
    isz = jnp.dtype(vocab_emb.dtype).itemsize
    assert V >= T, "gather path needs vocab_size >= tile_tokens (aggregate-wait descriptor)"

    per_tile = T * D * isz
    vmem_needed = (nbuf + 4) * per_tile                  # ring + pos/out double-buffers
    vmem_limit = int(min(100 << 20, max(2 * vmem_needed, 16 << 20)))
    cost = pl.CostEstimate(
        flops=N * D,
        transcendentals=0,
        bytes_accessed=3 * N * D * isz + 4 * N,
    )

    grid_spec = pltpu.PrefetchScalarGridSpec(
        num_scalar_prefetch=1,                           # ids -> SMEM
        grid=(num_tiles,),
        in_specs=[
            pl.BlockSpec(memory_space=pl.ANY),           # vocab stays in HBM
            pl.BlockSpec((T, D), lambda t, ids: (t % tiles_per_seq, 0)),
        ],
        out_specs=pl.BlockSpec((T, D), lambda t, ids: (t, 0)),
        scratch_shapes=[
            pltpu.VMEM((nbuf, T, D), vocab_emb.dtype),   # gather slot ring
            pltpu.SemaphoreType.DMA((nbuf,)),            # one sem per slot
        ],
    )
    return pl.pallas_call(
        _make_gather_kernel(T, num_tiles, nbuf),
        out_shape=jax.ShapeDtypeStruct((N, D), vocab_emb.dtype),
        grid_spec=grid_spec,
        compiler_params=pltpu.CompilerParams(
            # Cross-step prefetch state (slots primed at t == 0) requires a
            # sequential grid.
            # TODO(synk): v7x dual-TensorCore split would need per-core slot /
            # semaphore sets and a parallel/core grid axis restructure.
            dimension_semantics=("arbitrary",),
            vmem_limit_bytes=vmem_limit,
        ),
        cost_estimate=cost,
    )(ids_flat, vocab_emb, pos_emb)


# ---------------------------------------------------------------------------
# Wrapper
# ---------------------------------------------------------------------------
def _pick_tile_tokens(seq_len, hidden, itemsize, nbuf, max_tile=128,
                      vmem_budget=24 << 20):
    """Largest divisor of seq_len that keeps output stores sublane-dense for
    the dtype and keeps (nbuf + 4) tile-sized buffers inside vmem_budget."""
    sub = {4: 8, 2: 16, 1: 32}.get(itemsize, 8)
    cap = max(8, min(max_tile, vmem_budget // max(1, (nbuf + 4) * hidden * itemsize)))
    best = None
    for mult in (sub, 8):
        for cand in range(mult, min(seq_len, cap) + 1, mult):
            if seq_len % cand == 0:
                best = cand
        if best is not None:
            break
    if best is None:
        raise ValueError(
            "seq_length=%d needs a multiple-of-8 divisor <= %d" % (seq_len, cap))
    return best


def gpt_embedding_forward(input_ids, vocab_emb, pos_emb, *,
                          tile_tokens=None, use_gather=None, nbuf=3):
    """Pallas equivalent of GPTEmbedding.forward(input_ids) with
    position_ids=None and tokentype_ids=None (num_token_types=0)."""
    B, S = input_ids.shape
    V, D = vocab_emb.shape
    assert pos_emb.shape == (S, D)
    N = B * S

    # Mixed table dtypes would silently change the output dtype; unify here.
    pos_emb = pos_emb.astype(vocab_emb.dtype)
    isz = jnp.dtype(vocab_emb.dtype).itemsize
    nbuf = max(2, int(nbuf))

    T = tile_tokens if tile_tokens is not None else _pick_tile_tokens(S, D, isz, nbuf)
    assert S % T == 0 and N % T == 0 and T % 8 == 0

    if use_gather is None:
        # Tiny tables: skip all DMA descriptors / semaphore waits entirely.
        use_gather = not (V <= 1024 and V * D * isz <= (2 << 20))

    # torch.nn.Embedding would raise on out-of-range ids; clamp so a bad id
    # cannot DMA adjacent HBM silently.
    ids_flat = jnp.clip(input_ids.reshape(N).astype(jnp.int32), 0, V - 1)
    # TODO(synk): for very long flattened sequences (N >~ 64K tokens) the
    # scalar-prefetched id array approaches the SMEM ceiling; stage per-tile id
    # chunks from HBM instead.

    if use_gather:
        out = _gather_embed(ids_flat, vocab_emb, pos_emb, T, nbuf)
    else:
        out = _onehot_embed(ids_flat, vocab_emb, pos_emb, T)
    return out.reshape(B, S, D)


def _xavier_normal(key, shape):
    # torch.nn.init.xavier_normal_ for a 2D (fan_out, fan_in) weight:
    # std = sqrt(2 / (fan_in + fan_out))
    fan_out, fan_in = shape
    std = (2.0 / (fan_in + fan_out)) ** 0.5
    return std * jax.random.normal(key, shape, dtype=jnp.float32)


if __name__ == "__main__":
    # Small shapes consistent with the module: batch=2, seq=8, vocab=64,
    # hidden=128 (multiple of 128 keeps output stores lane-dense).
    B, S, D, V = 2, 8, 128, 64
    # TODO(synk): token-type embedding branch not implemented (module default
    # num_token_types=0 disables it); only the default arange-position path.

    key = jax.random.PRNGKey(0)
    k_ids, k_vocab, k_pos = jax.random.split(key, 3)

    input_ids = jax.random.randint(k_ids, (B, S), 0, V, dtype=jnp.int32)
    vocab_emb = _xavier_normal(k_vocab, (V, D))   # nn.Embedding(V, D).weight
    pos_emb = _xavier_normal(k_pos, (S, D))       # nn.Embedding(S, D).weight

    # Pure-JAX reference: word + position embeddings (position ids = arange(S)).
    ref = jnp.take(vocab_emb, input_ids, axis=0) + pos_emb[None, :, :]

    # Path A: small-vocab VMEM-resident (one-hot) path — auto-dispatched here.
    out_a = jax.block_until_ready(gpt_embedding_forward(input_ids, vocab_emb, pos_emb))
    assert out_a.shape == (B, S, D) and out_a.dtype == jnp.float32
    assert jnp.allclose(out_a, ref, atol=1e-4, rtol=1e-4), "one-hot path mismatch"

    # Path B: HBM-gather path (the one a real GPT vocab size would use), forced.
    out_b = jax.block_until_ready(
        gpt_embedding_forward(input_ids, vocab_emb, pos_emb, use_gather=True))
    assert out_b.shape == (B, S, D) and out_b.dtype == jnp.float32
    assert jnp.allclose(out_b, ref, atol=1e-6, rtol=1e-6), "gather path mismatch"

    print("KERNEL_OK")
</pallas_src>

<mosaic_0001>
module attributes {stable_mosaic.version = 11 : i64} {
  func.func @_onehot_embed_kernel(%arg0: i32, %arg1: memref<8x1xi32, #tpu.memory_space<vmem>>, %arg2: memref<64x128xf32, #tpu.memory_space<vmem>>, %arg3: memref<8x128xf32, #tpu.memory_space<vmem>>, %arg4: memref<8x128xf32, #tpu.memory_space<vmem>>) attributes {dimension_semantics = [#tpu.dimension_semantics<parallel>], iteration_bounds = array<i64: 2>, scalar_prefetch = 0 : i64, scratch_operands = 0 : i64, tpu.core_type = #tpu.core_type<tc>, window_params = [{transform_indices = @transform_0, window_bounds = array<i64: 8, 1>}, {pipeline_mode = #tpu.pipeline_mode<synchronous>, transform_indices = @transform_1, window_bounds = array<i64: 64, 128>}, {transform_indices = @transform_2, window_bounds = array<i64: 8, 128>}, {transform_indices = @transform_3, window_bounds = array<i64: 8, 128>}]} {
    %c0 = arith.constant 0 : index
    %c0_0 = arith.constant 0 : index
    %0 = vector.load %arg1[%c0, %c0_0] : memref<8x1xi32, #tpu.memory_space<vmem>>, vector<8x1xi32>
    %1 = tpu.iota {dimensions = array<i32: 1>} : vector<8x64xi32>
    %2 = vector.broadcast %0 : vector<8x1xi32> to vector<8x64xi32>
    %3 = arith.cmpi eq, %1, %2 : vector<8x64xi32>
    %4 = arith.extui %3 : vector<8x64xi1> to vector<8x64xi32>
    %5 = arith.sitofp %4 : vector<8x64xi32> to vector<8x64xf32>
    %c0_1 = arith.constant 0 : index
    %c0_2 = arith.constant 0 : index
    %6 = vector.load %arg2[%c0_1, %c0_2] : memref<64x128xf32, #tpu.memory_space<vmem>>, vector<64x128xf32>
    %cst = arith.constant dense<0.000000e+00> : vector<8x128xf32>
    %7 = tpu.matmul %5, %6, %cst {dimension_numbers = #tpu.dot_dimension_numbers<[1], [0], [0], [1], [0, 0, 1, 1], [], []>, precision = #tpu.contract_precision<fp32>} : vector<8x64xf32>, vector<64x128xf32>, vector<8x128xf32> -> vector<8x128xf32>
    %c0_3 = arith.constant 0 : index
    %c0_4 = arith.constant 0 : index
    %8 = vector.load %arg3[%c0_3, %c0_4] : memref<8x128xf32, #tpu.memory_space<vmem>>, vector<8x128xf32>
    %9 = arith.addf %7, %8 : vector<8x128xf32>
    %c0_5 = arith.constant 0 : index
    %c0_6 = arith.constant 0 : index
    %10 = vector.load %arg4[%c0_5, %c0_6] : memref<8x128xf32, #tpu.memory_space<vmem>>, vector<8x128xf32>
    tpu.vector_store %arg4[%c0_5, %c0_6], %9 {strides = array<i32>} : memref<8x128xf32, #tpu.memory_space<vmem>>, vector<8x128xf32>,
    return
  }
  func.func @transform_0(%arg0: i32) -> (i32, i32) {
    %c0_i32 = arith.constant 0 : i32
    %c0_i32_0 = arith.constant 0 : i32
    return %arg0, %c0_i32 : i32, i32
  }
  func.func @transform_1(%arg0: i32) -> (i32, i32) {
    %c0_i32 = arith.constant 0 : i32
    %c0_i32_0 = arith.constant 0 : i32
    %c0_i32_1 = arith.constant 0 : i32
    return %c0_i32, %c0_i32_0 : i32, i32
  }
  func.func @transform_2(%arg0: i32) -> (i32, i32) {
    %c1_i32 = arith.constant 1 : i32
    %c0_i32 = arith.constant 0 : i32
    %0 = arith.cmpi eq, %c1_i32, %c0_i32 : i32
    %c1_i32_0 = arith.constant 1 : i32
    %1 = arith.select %0, %c1_i32_0, %c1_i32 : i32
    %2 = arith.remsi %arg0, %1 : i32
    %c0_i32_1 = arith.constant 0 : i32
    %3 = arith.cmpi ne, %2, %c0_i32_1 : i32
    %c0_i32_2 = arith.constant 0 : i32
    %4 = arith.cmpi slt, %2, %c0_i32_2 : i32
    %c0_i32_3 = arith.constant 0 : i32
    %5 = arith.cmpi slt, %1, %c0_i32_3 : i32
    %6 = arith.xori %4, %5 : i1
    %7 = arith.andi %6, %3 : i1
    %8 = arith.addi %2, %1 : i32
    %9 = arith.select %7, %8, %2 : i32
    %c0_i32_4 = arith.constant 0 : i32
    %c0_i32_5 = arith.constant 0 : i32
    return %9, %c0_i32_4 : i32, i32
  }
  func.func @transform_3(%arg0: i32) -> (i32, i32) {
    %c0_i32 = arith.constant 0 : i32
    %c0_i32_0 = arith.constant 0 : i32
    return %arg0, %c0_i32 : i32, i32
  }
}

</mosaic_0001>

<bundles_post_ra>
// kernel: tpu_custom_call.1
= control target key start
LH: loop header
LB: loop body
LE: loop exit
PB: predicated region body
PF: predicated region fallthrough
CT: control target
= control target key end

     0   :  { %8 = vsyncpa [#allocation3], 0  ;;  %s1484_s0 = inlined_call_operand.vmem [shape: s32[16,1], index: 0, kind: input, shape index: {}]   ;;  %s1485_s1 = inlined_call_operand.hbm [shape: f32[64,128], index: 1, kind: input, shape index: {}]   ;;  %s1486_s2 = inlined_call_operand.vmem [shape: f32[8,128], index: 2, kind: input, shape index: {}]   ;;  %s1487_s3 = inlined_call_operand.hbm [shape: f32[16,128], index: 3, kind: output, shape index: {}]  }
   0x1   :  { %9 = vsyncpa [#allocation4], 0 }
   0x2   :  { %11 = vsyncpa [#allocation4 + $0x1], 0  ;;  %s1185_s12 = smov 0   ;;  %s1187_s13 = smov 0  }
   0x3   :  { %s1189_s14 = smov 0   ;;  %s1191_s15 = smov 0  }
   0x4 LB: > { %s1206_s16 = sadd.s32 4294967295, %s1156_s15   ;;  %s826_s17 = sadd.s32 4294967294, %s1156_s15   ;;  %s1156_s15 = sphi %s1191_s15, %s1495_s15   ;;  %s1152_s14 = sphi %s1189_s14, %s1494_s14   ;;  %s1148_s13 = sphi %s1187_s13, %s1493_s13   ;;  %s1144_s12 = sphi %s1185_s12, %s1492_s12  }
   0x5   : > { %s1210_s18 = sadd.s32 1, %s1156_s15   ;;  %s92_s19 = sadd.s32 1, %s1152_s14 }
   0x6   : > { %s89_s20 = ssub.s32 %s1156_s15, %s1210_s18  ;;  %p102_p0 = scmp.ne.s32.totalorder %s1152_s14, %s1148_s13 }
   0x7   : > { %p90_p1 = scmp.eq.s32.totalorder %s89_s20, 0  ;;  %p103_p2 = scmp.eq.s32.totalorder %s1206_s16, 1 }
   0x8   : > { %p108_p3 = scmp.ne.s32.totalorder %s1148_s13, %s1144_s12  ;;  %p109_p4 = scmp.eq.s32.totalorder %s826_s17, 1 }
   0x9   : > { %s1221_s21 = scalar_select %p90_p1, %s1152_s14, %s92_s19  }
   0xa   : > { %p1223_p5 = por %p103_p2, %p102_p0  ;;  %p1227_p6 = por %p109_p4, %p108_p3 }
   0xb   : > { %p827_p7 = scmp.ge.s32.totalorder %s1156_s15, 1  ;;  %p116_p8 = scmp.lt.s32.totalorder %s1156_s15, 3 }
   0xc   : > { %s1489_s23 = scalar_select %p1227_p6, 1, 0 }
   0xd   : > { %p1024_p9 = scmp.eq.s32.totalorder %s1206_s16, 0  ;;  %p1234_p10 = pnand %p827_p7, %p116_p8 }
   0xe   : > { %s1158_s25 = smov [#allocation2]  }
   0xf   : > { %s128_s26 = sshll.u32 %s1158_s25, 4  ;;  %p1016_p11 = pneg %p1234_p10  ;;  %s129_s26 = int_to_ptr.vmem [resolvable:$true] %s128_s26 }
  0x10   : > { %s1077_s27 = scalar_lea.vmem %s129_s26, 1024  ;;  %p1085_p3 = scmp.lt.s32.totalorder %s129_s26, %s129_s26 }
  0x11   : > { %p1017_p12 = pnand %p1024_p9, %p1016_p11  ;;  %p1078_p0 = scmp.ne.s32.totalorder %s129_s26, %s1077_s27 }
  0x12   : > { %p1086_p4 = scmp.lt.s32.totalorder %s1077_s27, %s1077_s27 }
  0x13   : > { %p1068_p13 = pneg %p1017_p12 }
  0x14   : > { %p1087_p6 = por %p1086_p4, %p1085_p3 }
  0x15   : > { %p1080_p1 = pnand %p1078_p0, %p1068_p13 }
  0x17   : > { %p1081_p2 = pneg %p1080_p1 }
  0x19   : > { %p1088_p7 = pnand %p1087_p6, %p1081_p2 }
  0x1b   : > { %1091 = shalt.err (!%p1088_p7)
}
  0x1c   : > { %s1159_s28 = smov 128   ;;  %s1160_s29 = smov 8  }
  0x1d   : > { %1019 = dma.hbm_to_vmem [thread:$0]  (!%p1017_p12), %s1485_s1, 1024, %s129_s26, [#allocation3], %s1159_s28, %s1159_s28, %s1160_s29  }
  0x1e   : > { %154 = sbr.rel (%p1234_p10) target bundleno = 422 (0x1a6), region = 32 }
  0x23   : > { %1135 = dma.done.wait (%p1024_p9), [#allocation3], 1024  }
  0x24   : > { %1137 = vsyncadd (%p1024_p9), [#allocation3], 4294966272  ;;  %p177_p8 = scmp.lt.s32.totalorder %s1206_s16, 1  ;;  %v1161_v0 = vmov 0   ;;  %v1162_v1 = vmov 0.0   ;;  %vm1163_vm0 = vmmov 0   ;;  %v182_v51 = vlaneseq }
  0x25   : > { %1065 = vset.pattern.permute.xlu0 %v1161_v0  ;;  %915 = vmatprep.subr.mxu1 %v1162_v1  ;;  %v197_v3 = vld [vmem:[#allocation2 + $0x38] sm:$0xff]  ;;  %v196_v4 = vld [vmem:[#allocation2 + $0x30] sm:$0xff]  ;;  %v195_v7 = vld [vmem:[#allocation2 + $0x28] sm:$0xff]  ;;  %vm199_vm1 = vcmask 523264   ;;  %s174_s17 = sand.u32 1, %s1148_s13   ;;  %s839_s20 = sshll.u32 %s1206_s16, 7 }
  0x26   : > { %s178_s5 = scalar_select %p177_p8, %s1206_s16, 1  ;;  %896 = vmatprep.subr.mxu0 %v1162_v1  ;;  %931 = vmatprep.mubr.msk.f32.mxu1 %vm1163_vm0, %v1162_v1  ;;  %v1262_v5 = vand.u32 4294901760, %v197_v3  ;;  %v1264_v6 = vand.u32 4294901760, %v196_v4  ;;  %v194_v8 = vld [vmem:[#allocation2 + $0x20] sm:$0xff]  ;;  %v193_v9 = vld [vmem:[#allocation2 + $0x18] sm:$0xff]  ;;  %v1266_v10 = vand.u32 4294901760, %v195_v7 }
  0x27   : > { %912 = vmatprep.mubr.msk.f32.mxu0 %vm1163_vm0, %v1162_v1  ;;  %v1268_v11 = vand.u32 4294901760, %v194_v8  ;;  %v1270_v12 = vand.u32 4294901760, %v193_v9  ;;  %v192_v13 = vld [vmem:[#allocation2 + $0x10] sm:$0xff]  ;;  %v191_v14 = vld [vmem:[#allocation2 + $0x8] sm:$0xff]  ;;  %v190_v15 = vld [vmem:[#allocation2] sm:$0xff]  ;;  %v183_v52 = vand.u32 127, %v182_v51  ;;  %s753_s28 = scalar_lea.hbm %s1487_s3, %s839_s20 }
  0x28   : > { %s833_s6 = sshll.u32 %s178_s5, 3  ;;  %v1273_v16 = vsub.f32 %v197_v3, %v1262_v5  ;;  %v1276_v17 = vsub.f32 %v196_v4, %v1264_v6  ;;  %897 = vmatpush3.msra.mxu0 %v1262_v5  ;;  %v1279_v18 = vand.u32 4294901760, %v192_v13  ;;  %v1281_v19 = vand.u32 4294901760, %v191_v14  ;;  %s832_s19 = sshll.u32 %s174_s17, 3 }
  0x29   : > { %s180_s9 = scalar_lea.vmem %s1484_s0, %s833_s6  ;;  %v1284_v20 = vsub.f32 %v195_v7, %v1266_v10  ;;  %v1287_v21 = vsub.f32 %v194_v8, %v1268_v11  ;;  %v1290_v22 = vsub.f32 %v193_v9, %v1270_v12  ;;  %898 = vmatprep.subr.mxu0 %v1162_v1  ;;  %v1293_v23 = vand.u32 4294901760, %v190_v15  ;;  %s176_s24 = scalar_lea.vmem [#allocation5], %s832_s19 }
  0x2a   : > { %v181_v2 = vld [vmem:[%s180_s9] sm:$0xff]  ;;  %v305_v24 = vand.u32 4294901760, %v1273_v16  ;;  %v312_v25 = vand.u32 4294901760, %v1276_v17  ;;  %v1298_v26 = vsub.f32 %v192_v13, %v1279_v18  ;;  %899 = vmatpush3.msra.mxu0 %v1264_v6  ;;  %v1312_v32 = vsub.f32 %v191_v14, %v1281_v19  ;;  %s755_s25 = sshll.u32 %s176_s24, 4  ;;  %s742_s29 = scalar_lea.sflag [#allocation4], %s174_s17  ;;  %s756_s25 = int_to_ptr.vmem [resolvable:$true] %s755_s25 }
  0x2b   : > { %185 = vperm.xlu0 %1065, %v181_v2   ;;  %v319_v27 = vand.u32 4294901760, %v1284_v20  ;;  %v326_v28 = vand.u32 4294901760, %v1287_v21  ;;  %900 = vmatprep.subr.mxu0 %v1162_v1  ;;  %v333_v31 = vand.u32 4294901760, %v1290_v22  ;;  %v1320_v34 = vsub.f32 %v190_v15, %v1293_v23  ;;  %s1092_s30 = scalar_lea.vmem %s756_s25, 128  ;;  %s1164_s4 = smov [#allocation5]  }
  0x2c   : > { %v306_v29 = vsub.f32 %v1273_v16, %v305_v24  ;;  %v313_v30 = vsub.f32 %v1276_v17, %v312_v25  ;;  %901 = vmatpush3.msra.mxu0 %v1266_v10  ;;  %v340_v38 = vand.u32 4294901760, %v1298_v26  ;;  %v347_v41 = vand.u32 4294901760, %v1312_v32  ;;  %p1093_p6 = scmp.ne.s32.totalorder %s756_s25, %s1092_s30  ;;  %s1096_s5 = sshll.u32 %s1164_s4, 4  ;;  %s1097_s5 = int_to_ptr.vmem [resolvable:$false] %s1096_s5 }
  0x2d   : > { %v320_v33 = vsub.f32 %v1284_v20, %v319_v27  ;;  %902 = vmatprep.subr.mxu0 %v1162_v1  ;;  %v327_v37 = vsub.f32 %v1287_v21, %v326_v28  ;;  %v334_v40 = vsub.f32 %v1290_v22, %v333_v31  ;;  %v354_v44 = vand.u32 4294901760, %v1320_v34  ;;  %s1098_s16 = scalar_lea.vmem %s1097_s5, 256  ;;  %p1099_p11 = scmp.lt.s32.totalorder %s756_s25, %s1097_s5 }
  0x2e   : > { %v307_v35 = vand.u32 4294901760, %v306_v29  ;;  %v314_v36 = vand.u32 4294901760, %v313_v30  ;;  %903 = vmatpush3.msra.mxu0 %v1268_v11  ;;  %v341_v43 = vsub.f32 %v1298_v26, %v340_v38  ;;  %v348_v46 = vsub.f32 %v1312_v32, %v347_v41  ;;  %p1094_p9 = pnand %p1093_p6, %p1223_p5  ;;  %p1100_p12 = scmp.lt.s32.totalorder %s1098_s16, %s1092_s30 }
  0x2f   : > { %904 = vmatprep.subr.mxu0 %v1162_v1  ;;  %v321_v39 = vand.u32 4294901760, %v320_v33  ;;  %v328_v42 = vand.u32 4294901760, %v327_v37  ;;  %v335_v45 = vand.u32 4294901760, %v334_v40  ;;  %v355_v48 = vsub.f32 %v1320_v34, %v354_v44 }
  0x30   : > { %916 = vmatpush3.msra.mxu1 %v307_v35  ;;  %905 = vmatpush3.msra.mxu0 %v1270_v12  ;;  %v342_v47 = vand.u32 4294901760, %v341_v43  ;;  %v349_v49 = vand.u32 4294901760, %v348_v46  ;;  %p1095_p10 = pneg %p1094_p9  ;;  %p1101_p13 = por %p1100_p12, %p1099_p11 }
  0x31   : > { %917 = vmatprep.subr.mxu1 %v1162_v1  ;;  %906 = vmatprep.subr.mxu0 %v1162_v1  ;;  %v356_v50 = vand.u32 4294901760, %v355_v48 }
  0x32   : > { %918 = vmatpush3.msra.mxu1 %v314_v36  ;;  %907 = vmatpush3.msra.mxu0 %v1279_v18  ;;  %p1102_p0 = pnand %p1101_p13, %p1095_p10 }
  0x33   : > { %919 = vmatprep.subr.mxu1 %v1162_v1  ;;  %908 = vmatprep.subr.mxu0 %v1162_v1 }
  0x34   : > { %920 = vmatpush3.msra.mxu1 %v321_v39  ;;  %909 = vmatpush3.msra.mxu0 %v1281_v19 }
  0x35   : > { %921 = vmatprep.subr.mxu1 %v1162_v1  ;;  %910 = vmatprep.subr.mxu0 %v1162_v1 }
  0x36   : > { %922 = vmatpush3.msra.mxu1 %v328_v42  ;;  %911 = vmatpush3.msra.mxu0 %v1293_v23 }
  0x37   : > { %923 = vmatprep.subr.mxu1 %v1162_v1  ;;  %934 = vmatprep.subr.mxu0 %v1162_v1 }
  0x38   : > { %924 = vmatpush3.msra.mxu1 %v335_v45 }
  0x39   : > { %925 = vmatprep.subr.mxu1 %v1162_v1 }
  0x3a   : > { %926 = vmatpush3.msra.mxu1 %v342_v47 }
  0x3b   : > { %927 = vmatprep.subr.mxu1 %v1162_v1 }
  0x3c   : > { %928 = vmatpush3.msra.mxu1 %v349_v49 }
  0x3d   : > { %929 = vmatprep.subr.mxu1 %v1162_v1 }
  0x3e   : > { %930 = vmatpush3.msra.mxu1 %v356_v50 }
  0x3f   : > { %953 = vmatprep.subr.mxu1 %v1162_v1 }
  0xa6   : > { %v186_v53 = vpop.permute.xlu0 %185 }
  0xa7   : > { %vm187_vm2 = vcmp.eq.s32.totalorder %v183_v52, %v186_v53 }
  0xa8   : > { %v1359_v54 = vsel %vm187_vm2, 1.0, %v1162_v1 }
  0xa9   : > { %v201_v55 = vsel %vm199_vm1, %v1359_v54, 0  ;;  %932 = vmatmul.mubr.msk.f32.vlgmr.msra.gmra.mxu1 %vm199_vm1, %v1359_v54 }
  0xaa   : > { %v277_v56 = vsub.f32 %v201_v55, %v201_v55  ;;  %954 = vmatpush3.msra.mxu1 %v1262_v5  ;;  %969 = vmatprep.mubr.msk.f32.mxu1 %vm1163_vm0, %v1162_v1 }
  0xab   : > { %955 = vmatprep.subr.mxu1 %v1162_v1 }
  0xac   : > { %956 = vmatpush3.msra.mxu1 %v1264_v6  ;;  %v278_v57 = vand.u32 4294901760, %v277_v56 }
  0xad   : > { %957 = vmatprep.subr.mxu1 %v1162_v1 }
  0xae   : > { %958 = vmatpush3.msra.mxu1 %v1266_v10  ;;  %v279_v58 = vsub.f32 %v277_v56, %v278_v57 }
  0xaf   : > { %959 = vmatprep.subr.mxu1 %v1162_v1 }
  0xb0   : > { %960 = vmatpush3.msra.mxu1 %v1268_v11  ;;  %v280_v59 = vand.u32 4294901760, %v279_v58 }
  0xb1   : > { %961 = vmatprep.subr.mxu1 %v1162_v1 }
  0xb2   : > { %962 = vmatpush3.msra.mxu1 %v1270_v12  ;;  %913 = vmatmul.mubr.f32.vlgmr.msra.gmra.mxu0 %v280_v59 }
  0xb3   : > { %935 = vmatpush3.msra.mxu0 %v1273_v16  ;;  %963 = vmatprep.subr.mxu1 %v1162_v1 }
  0xb4   : > { %936 = vmatprep.subr.mxu0 %v1162_v1  ;;  %964 = vmatpush3.msra.mxu1 %v1279_v18 }
  0xb5   : > { %937 = vmatpush3.msra.mxu0 %v1276_v17  ;;  %965 = vmatprep.subr.mxu1 %v1162_v1 }
  0xb6   : > { %938 = vmatprep.subr.mxu0 %v1162_v1  ;;  %966 = vmatpush3.msra.mxu1 %v1281_v19 }
  0xb7   : > { %939 = vmatpush3.msra.mxu0 %v1284_v20  ;;  %967 = vmatprep.subr.mxu1 %v1162_v1 }
  0xb8   : > { %940 = vmatprep.subr.mxu0 %v1162_v1  ;;  %968 = vmatpush3.msra.mxu1 %v1293_v23 }
  0xb9   : > { %941 = vmatpush3.msra.mxu0 %v1287_v21  ;;  %970 = vmatmul.mubr.f32.vlgmr.msra.gmra.mxu1 %v278_v57 }
  0xba   : > { %991 = vmatprep.subr.mxu1 %v1162_v1  ;;  %942 = vmatprep.subr.mxu0 %v1162_v1 }
  0xbb   : > { %992 = vmatpush3.msra.mxu1 %v1262_v5  ;;  %943 = vmatpush3.msra.mxu0 %v1290_v22  ;;  %v198_v5 = vld [vmem:[%s1486_s2] sm:$0xff] }
  0xbc   : > { %993 = vmatprep.subr.mxu1 %v1162_v1  ;;  %944 = vmatprep.subr.mxu0 %v1162_v1 }
  0xbd   : > { %994 = vmatpush3.msra.mxu1 %v1264_v6  ;;  %945 = vmatpush3.msra.mxu0 %v1298_v26 }
  0xbe   : > { %995 = vmatprep.subr.mxu1 %v1162_v1  ;;  %946 = vmatprep.subr.mxu0 %v1162_v1 }
  0xbf   : > { %996 = vmatpush3.msra.mxu1 %v1266_v10  ;;  %947 = vmatpush3.msra.mxu0 %v1312_v32 }
  0xc0   : > { %997 = vmatprep.subr.mxu1 %v1162_v1  ;;  %948 = vmatprep.subr.mxu0 %v1162_v1 }
  0xc1   : > { %998 = vmatpush3.msra.mxu1 %v1268_v11  ;;  %949 = vmatpush3.msra.mxu0 %v1320_v34 }
  0xc2   : > { %950 = vmatprep.mubr.msk.f32.mxu0 %vm1163_vm0, %v1162_v1  ;;  %999 = vmatprep.subr.mxu1 %v1162_v1 }
  0xc3   : > { %951 = vmatmul.mubr.f32.vlgmr.msra.gmra.mxu0 %v277_v56  ;;  %972 = vmatprep.subr.mxu0 %v1162_v1 }
  0xc4   : > { %1000 = vmatpush3.msra.mxu1 %v1270_v12  ;;  %973 = vmatpush3.msra.mxu0 %v305_v24 }
  0xc5   : > { %1001 = vmatprep.subr.mxu1 %v1162_v1  ;;  %974 = vmatprep.subr.mxu0 %v1162_v1 }
  0xc6   : > { %1002 = vmatpush3.msra.mxu1 %v1279_v18  ;;  %975 = vmatpush3.msra.mxu0 %v312_v25 }
  0xc7   : > { %1003 = vmatprep.subr.mxu1 %v1162_v1  ;;  %976 = vmatprep.subr.mxu0 %v1162_v1 }
  0xc8   : > { %1004 = vmatpush3.msra.mxu1 %v1281_v19  ;;  %977 = vmatpush3.msra.mxu0 %v319_v27 }
  0xc9   : > { %1005 = vmatprep.subr.mxu1 %v1162_v1  ;;  %978 = vmatprep.subr.mxu0 %v1162_v1 }
  0xca   : > { %1006 = vmatpush3.msra.mxu1 %v1293_v23  ;;  %1007 = vmatprep.mubr.msk.f32.mxu1 %vm1163_vm0, %v1162_v1 }
  0xcb   : > { %979 = vmatpush3.msra.mxu0 %v326_v28  ;;  %1008 = vmatmul.mubr.msk.f32.vlgmr.msra.gmra.mxu1 %vm199_vm1, %v1359_v54 }
  0xcc   : > { %980 = vmatprep.subr.mxu0 %v1162_v1  ;;  %988 = vmatprep.mubr.msk.f32.mxu0 %vm1163_vm0, %v1162_v1 }
  0xcd   : > { %981 = vmatpush3.msra.mxu0 %v333_v31 }
  0xce   : > { %982 = vmatprep.subr.mxu0 %v1162_v1 }
  0xcf   : > { %983 = vmatpush3.msra.mxu0 %v340_v38 }
  0xd0   : > { %984 = vmatprep.subr.mxu0 %v1162_v1 }
  0xd1   : > { %985 = vmatpush3.msra.mxu0 %v347_v41 }
  0xd2   : > { %986 = vmatprep.subr.mxu0 %v1162_v1 }
  0xd3   : > { %987 = vmatpush3.msra.mxu0 %v354_v44 }
  0xd4   : > { %989 = vmatmul.mubr.msk.f32.vlgmr.msra.gmra.mxu0 %vm199_vm1, %v1359_v54 }
 0x169   : > { %v393_v60 = vpop.f32.mrf.mxu1 }
 0x16b   : > { %v933_v61 = vpop.f32.mrf.mxu1 }
 0x172   : > { %v282_v62 = vpop.f32.mrf.mxu0 }
 0x173   : > { %v283_v1 = vadd.f32 %v282_v62, %v198_v5 }
 0x174   : > { %v914_v63 = vpop.f32.mrf.mxu0 }
 0x175   : > { %v394_v7 = vadd.f32 %v393_v60, %v283_v1 }
 0x179   : > { %v562_v0 = vpop.f32.mrf.mxu1 }
 0x17b   : > { %v971_v2 = vpop.f32.mrf.mxu1 }
 0x183   : > { %v481_v3 = vpop.f32.mrf.mxu0 }
 0x184   : > { %v482_v9 = vadd.f32 %v481_v3, %v394_v7 }
 0x185   : > { %v952_v4 = vpop.f32.mrf.mxu0 }
 0x186   : > { %v563_v10 = vadd.f32 %v562_v0, %v482_v9 }
 0x18b   : > { %v736_v6 = vpop.f32.mrf.mxu1 }
 0x18d   : > { %v1009_v8 = vpop.f32.mrf.mxu1 }
 0x194   : > { %v657_v11 = vpop.f32.mrf.mxu0 }
 0x195   : > { %v658_v12 = vadd.f32 %v657_v11, %v563_v10 }
 0x196   : > { %v990_v13 = vpop.f32.mrf.mxu0 }
 0x197   : > { %v737_v14 = vadd.f32 %v736_v6, %v658_v12 }
 0x199   : > { %740 = vst [vmem:[%s176_s24] sm:$0xff] %v737_v14 }
 0x19a   : > { %1105 = shalt.err (!%p1102_p0)
}
 0x19b   : > { %s1106_s6 = scalar_lea.hbm %s753_s28, 128  ;;  %s1110_s9 = scalar_lea.hbm %s1487_s3, 256 }
 0x19c   : > { %p1107_p1 = scmp.ne.s32.totalorder %s753_s28, %s1106_s6  ;;  %p1111_p4 = scmp.lt.s32.totalorder %s753_s28, %s1487_s3 }
 0x19d   : > { %p1112_p7 = scmp.lt.s32.totalorder %s1110_s9, %s1106_s6 }
 0x19e   : > { %p1108_p2 = pnand %p1107_p1, %p1223_p5 }
 0x19f   : > { %p1113_p8 = por %p1112_p7, %p1111_p4 }
 0x1a0   : > { %p1109_p3 = pneg %p1108_p2 }
 0x1a2   : > { %p1114_p6 = pnand %p1113_p8, %p1109_p3 }
 0x1a4   : > { %1117 = shalt.err (!%p1114_p6)
}
 0x1a5   : > { %1014 = dma.vmem_to_hbm [thread:$0]  (%p1223_p5), %s756_s25, 128, %s753_s28, %s742_s29  }
 0x1a6 PF: > { %p1026_p9 = scmp.ge.s32.totalorder %s1156_s15, 2  ;;  %s767_s17 = sand.u32 1, %s1144_s12  }
 0x1a7   : > { %p1491_p10 = scmp.ne.s32.totalorder %s1489_s23, 0  ;;  %s768_s19 = scalar_lea.sflag [#allocation4], %s767_s17 }
 0x1a9   : > { %p1021_p11 = pnand %p1026_p9, %p1491_p10 }
 0x1ab   : > { %p1022_p12 = pneg %p1021_p11 }
 0x1ad   : > { %1139 = dma.done.wait (%p1022_p12), %s768_s19, 128  }
 0x1ae   : > { %1141 = vsyncadd (%p1022_p12), %s768_s19, 4294967168  ;;  %p14_p13 = scmp.ge.s32.totalorder %s1210_s18, 4   ;;  %s1492_s12 = smov %s1148_s13 }
 0x1af   : > { %s1493_s13 = smov %s1152_s14  ;;  %s1494_s14 = smov %s1221_s21 }
 0x1b0   : > { %s1495_s15 = smov %s1210_s18  ;;  %16 = sbr.rel (!%p14_p13) target bundleno = 4 (0x4), region = 72 }
 0x1b5   :  { %773 = vsyncpa [#allocation3], 1 }
 0x1b6   :  { %775 = vsyncpa [#allocation3 + $0x1], 1 }
 0x1b7   :  { %776 = vsyncpa [#allocation4], 1 }
 0x1b8   :  { %778 = vsyncpa [#allocation4 + $0x1], 1 }

</bundles_post_ra>
